<compile_context>
chip_gen: v7x
topology: tpu7x:2x2x1
jax: 0.10.0
libtpu: 0.0.40
codegen_flags: <defaults>
</compile_context>

<pallas_src>
import functools

import jax
import jax.numpy as jnp
import numpy as np
from jax.experimental import pallas as pl
from jax.experimental.pallas import tpu as pltpu


def _round_up(a, b):
    return (a + b - 1) // b * b


def _pick_batch_block(n):
    """Largest B_blk <= 8 dividing n that still leaves >=2 grid steps."""
    min_steps = 2 if n >= 2 else 1
    best = 1
    for b in range(1, min(n, 8) + 1):
        if n % b == 0 and n // b >= min_steps:
            best = b
    return best


# --------------------------- fused DoubleConv kernel ------------------------
def _double_conv_kernel(mask_ref, x_ref, w1_ref, sh1_ref, w2_ref, sh2_ref,
                        o_ref, xp1_ref, xp2_ref, *, H, W, OFF, B_blk, mm_dtype):
    """(3x3 conv -> folded BN -> ReLU) x 2 for B_blk batch elements.

    Layout: channels in sublanes, flattened spatial (H*W) in lanes.

    mask_ref: (2, H*W)            f32 multiplicative border masks
                                  (row 0: w != 0, row 1: w != W-1)
    x_ref   : (B_blk, Cin,  H*W)  NCHW input, spatial flattened
    w1_ref  : (3, Cmid, 3*Cin)    kx-major conv1 weights, [kx, o, ky*Cin+c]
                                  (BN1 scale folded in, bf16)
    sh1_ref : (Cmid, 1)           BN1 shift (f32)
    w2_ref  : (3, Cout, 3*Cmid)   conv2 weights (BN2 scale folded in, bf16)
    sh2_ref : (Cout, 1)           BN2 shift (f32)
    o_ref   : (B_blk, Cout, H*W)
    xp1_ref : (3*Cin,  L) VMEM    ky-stacked padded-image scratch, stage 1
    xp2_ref : (3*Cmid, L) VMEM    ky-stacked padded-image scratch, stage 2
    """
    HW = H * W
    not_left = mask_ref[0:1, :]    # (1, HW), broadcast over output channels
    not_right = mask_ref[1:2, :]

    def zero_halo(xp_ref):
        # Only the lanes that are read by the kx slices but NOT overwritten by
        # the ky-shifted packs below need to be zero (top/bottom image rows of
        # the shifted copies + the two single-lane row-wrap edges).
        c3 = xp_ref.shape[0]
        xp_ref[:, OFF - 1:OFF + W] = jnp.zeros((c3, W + 1), xp_ref.dtype)
        xp_ref[:, OFF + HW - W:OFF + HW + 1] = jnp.zeros((c3, W + 1),
                                                         xp_ref.dtype)

    def pack(xp_ref, img):
        # Store the image 3x: sublane group ky holds the image shifted by
        # (1-ky) rows, so one lane slice per kx yields a (3*C, HW) operand
        # carrying all three ky taps stacked along the contraction dim.
        c = img.shape[0]
        for ky in range(3):
            off = OFF - (ky - 1) * W
            xp_ref[ky * c:(ky + 1) * c, off:off + HW] = img

    def conv3x3_bn_relu(xp_ref, w_ref, sh_ref):
        # Three kx-group matmuls with K = 3*C; bf16 MXU inputs, f32 accum.
        part = []
        for kx in range(3):
            s = OFF + (kx - 1)                     # static lane offset
            part.append(jnp.dot(w_ref[kx],
                                xp_ref[:, s:s + HW].astype(mm_dtype),
                                preferred_element_type=jnp.float32))
        # Left/right image-border masking AFTER the matmul (per kx group).
        acc = part[1] + not_left * part[0] + not_right * part[2]
        # BN scale already folded into the weights; shift + ReLU here (f32).
        return jnp.maximum(acc + sh_ref[...], 0.0)

    for b in range(B_blk):
        # Stage 1: in-kernel SAME padding + conv+BN+ReLU.
        zero_halo(xp1_ref)
        pack(xp1_ref, x_ref[b].astype(xp1_ref.dtype))
        h1 = conv3x3_bn_relu(xp1_ref, w1_ref, sh1_ref)

        # Stage 2: the intermediate never leaves VMEM; re-pad in place + conv.
        zero_halo(xp2_ref)
        pack(xp2_ref, h1)
        h2 = conv3x3_bn_relu(xp2_ref, w2_ref, sh2_ref)

        o_ref[b] = h2.astype(o_ref.dtype)   # 256-lane (multiple of 128) store


# ------------------------------ host-side helpers ---------------------------
def _fold_bn_into_conv(w_oihw, gamma, beta, mean, var, eps=1e-5):
    """Fold inference-mode BN into the conv: scale into weights, keep shift."""
    scale = gamma / jnp.sqrt(var + eps)
    shift = beta - mean * scale
    return w_oihw * scale[:, None, None, None], shift


def _group_weights(w_oihw):
    """(Cout, Cin, 3, 3) -> (3, Cout, 3*Cin) with index [kx, o, ky*Cin + c]."""
    co, ci = w_oihw.shape[:2]
    wt = jnp.transpose(w_oihw, (3, 0, 2, 1))      # (kx, Cout, ky, Cin)
    return wt.reshape(3, co, 3 * ci)


def double_conv_fused(x_nchw, params, *, mm_dtype=jnp.bfloat16):
    """DoubleConv forward (inference BN) as one fused Pallas call. NCHW in/out."""
    (w1, g1, b1, m1, v1), (w2, g2, b2, m2, v2) = params
    w1f, sh1 = _fold_bn_into_conv(w1, g1, b1, m1, v1)
    w2f, sh2 = _fold_bn_into_conv(w2, g2, b2, m2, v2)

    N, Cin, H, W = x_nchw.shape
    Cmid, Cout = w1.shape[0], w2.shape[0]
    HW = H * W

    # Pad channel counts to sublane multiples (8): whole (8,128) tiles for the
    # intermediate, scratches and weight slabs.  Padded channels are zero.
    Cin_p, Cmid_p, Cout_p = (_round_up(c, 8) for c in (Cin, Cmid, Cout))
    w1f = jnp.pad(w1f, ((0, Cmid_p - Cmid), (0, Cin_p - Cin), (0, 0), (0, 0)))
    sh1 = jnp.pad(sh1, (0, Cmid_p - Cmid))
    w2f = jnp.pad(w2f, ((0, Cout_p - Cout), (0, Cmid_p - Cmid), (0, 0), (0, 0)))
    sh2 = jnp.pad(sh2, (0, Cout_p - Cout))

    x = x_nchw.reshape(N, Cin, HW)
    if Cin_p != Cin:
        x = jnp.pad(x, ((0, 0), (0, Cin_p - Cin), (0, 0)))

    # kx-grouped weights with BN scale folded in; bf16 for the MXU.
    wg1 = _group_weights(w1f).astype(mm_dtype)    # (3, Cmid_p, 3*Cin_p)
    wg2 = _group_weights(w2f).astype(mm_dtype)    # (3, Cout_p, 3*Cmid_p)

    # Valid pixels start at a 128-aligned lane offset inside the padded flat
    # scratch; the zero halo lives in the surrounding lanes.
    OFF = max(128, _round_up(W + 1, 128))
    L = _round_up(OFF + HW + W + 1, 128)

    # Precomputed left/right border masks (trace-time numpy), reused by both
    # stages and all grid steps.
    col = np.arange(HW, dtype=np.int64) % W
    masks = jnp.asarray(np.stack([col != 0, col != W - 1]).astype(np.float32))

    B_blk = _pick_batch_block(N)

    kern = functools.partial(_double_conv_kernel, H=H, W=W, OFF=OFF,
                             B_blk=B_blk, mm_dtype=mm_dtype)
    out = pl.pallas_call(
        kern,
        out_shape=jax.ShapeDtypeStruct((N, Cout_p, HW), x_nchw.dtype),
        grid_spec=pltpu.PrefetchScalarGridSpec(
            num_scalar_prefetch=0,
            grid=(N // B_blk,),
            in_specs=[
                pl.BlockSpec((2, HW), lambda b: (0, 0)),
                pl.BlockSpec((B_blk, Cin_p, HW), lambda b: (b, 0, 0)),
                pl.BlockSpec((3, Cmid_p, 3 * Cin_p), lambda b: (0, 0, 0)),
                pl.BlockSpec((Cmid_p, 1), lambda b: (0, 0)),
                pl.BlockSpec((3, Cout_p, 3 * Cmid_p), lambda b: (0, 0, 0)),
                pl.BlockSpec((Cout_p, 1), lambda b: (0, 0)),
            ],
            out_specs=pl.BlockSpec((B_blk, Cout_p, HW), lambda b: (b, 0, 0)),
            scratch_shapes=[
                pltpu.VMEM((3 * Cin_p, L), jnp.float32),
                pltpu.VMEM((3 * Cmid_p, L), jnp.float32),
            ],
        ),
        compiler_params=pltpu.CompilerParams(
            dimension_semantics=("parallel",)),
    )(masks, x, wg1, sh1.reshape(-1, 1), wg2, sh2.reshape(-1, 1))

    out = out.reshape(N, Cout_p, H, W)
    return out[:, :Cout] if Cout_p != Cout else out


def _interp_matrix(n_out, n_in, dtype=jnp.float32):
    """Row-stochastic 1-D bilinear matrix matching align_corners=True."""
    if n_in == 1:
        return jnp.ones((n_out, 1), dtype)
    src = jnp.arange(n_out, dtype=jnp.float32) * ((n_in - 1) / (n_out - 1))
    i0 = jnp.clip(jnp.floor(src).astype(jnp.int32), 0, n_in - 2)
    t = src - i0.astype(jnp.float32)
    rows = jnp.arange(n_out)
    m = jnp.zeros((n_out, n_in), jnp.float32)
    m = m.at[rows, i0].add(1.0 - t)
    m = m.at[rows, i0 + 1].add(t)
    return m.astype(dtype)


def bilinear_upsample_x2(x_nchw):
    """nn.Upsample(scale_factor=2, mode='bilinear', align_corners=True)."""
    _, _, H, W = x_nchw.shape
    rh = _interp_matrix(2 * H, H, x_nchw.dtype)
    rw = _interp_matrix(2 * W, W, x_nchw.dtype)
    return jnp.einsum('ih,nchw,jw->ncij', rh, x_nchw, rw)


def up_forward(x1, x2, params):
    """Up.forward(x1, x2): upsample x1, pad to x2, concat, DoubleConv."""
    x1u = bilinear_upsample_x2(x1)
    dY = x2.shape[2] - x1u.shape[2]
    dX = x2.shape[3] - x1u.shape[3]
    x1u = jnp.pad(x1u, ((0, 0), (0, 0),
                        (dY // 2, dY - dY // 2), (dX // 2, dX - dX // 2)))
    x = jnp.concatenate([x2, x1u], axis=1)
    return double_conv_fused(x, params)


# ---------------- pure-JAX reference (for correctness check) ----------------
def _ref_conv_bn_relu(x, w, gamma, beta, mean, var, eps=1e-5):
    y = jax.lax.conv_general_dilated(
        x, w, window_strides=(1, 1), padding="SAME",
        dimension_numbers=("NCHW", "OIHW", "NCHW"))
    scale = gamma / jnp.sqrt(var + eps)
    shift = beta - mean * scale
    return jnp.maximum(y * scale[None, :, None, None]
                       + shift[None, :, None, None], 0.0)


def ref_up(x1, x2, params):
    p1, p2 = params
    x1u = bilinear_upsample_x2(x1)
    dY = x2.shape[2] - x1u.shape[2]
    dX = x2.shape[3] - x1u.shape[3]
    x1u = jnp.pad(x1u, ((0, 0), (0, 0),
                        (dY // 2, dY - dY // 2), (dX // 2, dX - dX // 2)))
    x = jnp.concatenate([x2, x1u], axis=1)
    y = _ref_conv_bn_relu(x, *p1)
    return _ref_conv_bn_relu(y, *p2)


if __name__ == "__main__":
    # Up(in_channels=8, out_channels=8, bilinear=True)
    #   x1: (N, 4, 8, 8)   -> upsampled to (N, 4, 16, 16)
    #   x2: (N, 4, 16, 16) (skip connection)
    #   concat -> (N, 8, 16, 16); DoubleConv(8, 8, mid_channels=4)
    N, C1, C2 = 2, 4, 4
    Cin, Cmid, Cout = C1 + C2, (C1 + C2) // 2, 8
    H, W = 16, 16

    keys = jax.random.split(jax.random.PRNGKey(0), 12)
    x1 = jax.random.normal(keys[0], (N, C1, H // 2, W // 2), jnp.float32)
    x2 = jax.random.normal(keys[1], (N, C2, H, W), jnp.float32)

    w1 = 0.1 * jax.random.normal(keys[2], (Cmid, Cin, 3, 3), jnp.float32)
    g1 = 1.0 + 0.1 * jax.random.normal(keys[3], (Cmid,), jnp.float32)
    b1 = 0.1 * jax.random.normal(keys[4], (Cmid,), jnp.float32)
    m1 = 0.1 * jax.random.normal(keys[5], (Cmid,), jnp.float32)
    v1 = 0.5 + jax.random.uniform(keys[6], (Cmid,), jnp.float32)

    w2 = 0.1 * jax.random.normal(keys[7], (Cout, Cmid, 3, 3), jnp.float32)
    g2 = 1.0 + 0.1 * jax.random.normal(keys[8], (Cout,), jnp.float32)
    b2 = 0.1 * jax.random.normal(keys[9], (Cout,), jnp.float32)
    m2 = 0.1 * jax.random.normal(keys[10], (Cout,), jnp.float32)
    v2 = 0.5 + jax.random.uniform(keys[11], (Cout,), jnp.float32)

    params = ((w1, g1, b1, m1, v1), (w2, g2, b2, m2, v2))

    out = jax.block_until_ready(jax.jit(up_forward)(x1, x2, params))
    ref = jax.block_until_ready(ref_up(x1, x2, params))

    # bf16 MXU operands (f32 accumulation) vs. the pure-f32 reference.
    np.testing.assert_allclose(np.asarray(out), np.asarray(ref),
                               rtol=5e-2, atol=5e-2)
    assert out.shape == (N, Cout, H, W)
    print("KERNEL_OK")
</pallas_src>

<mosaic_0001>
module attributes {stable_mosaic.version = 11 : i64} {
  func.func private @main(%arg0: i32) attributes {dimension_semantics = [#tpu.dimension_semantics<core_parallel>], iteration_bounds = array<i64: 2>, tpu.core_type = #tpu.core_type<sc_scalar_subcore>, window_params = []} {
    return
  }
}

module attributes {stable_mosaic.version = 11 : i64} {
  func.func private @main(%arg0: i32) attributes {dimension_semantics = [#tpu.dimension_semantics<core_parallel>], iteration_bounds = array<i64: 2>, tpu.core_type = #tpu.core_type<sc_scalar_subcore>, window_params = []} {
    return
  }
}

module attributes {stable_mosaic.version = 11 : i64} {
  func.func @_double_conv_kernel(%arg0: i32, %arg1: memref<2x256xf32, #tpu.memory_space<vmem>>, %arg2: memref<1x8x256xf32, #tpu.memory_space<vmem>>, %arg3: memref<3x8x24xbf16, #tpu.memory_space<vmem>>, %arg4: memref<8x1xf32, #tpu.memory_space<vmem>>, %arg5: memref<3x8x24xbf16, #tpu.memory_space<vmem>>, %arg6: memref<8x1xf32, #tpu.memory_space<vmem>>, %arg7: memref<1x8x256xf32, #tpu.memory_space<vmem>>, %arg8: memref<24x512xf32, #tpu.memory_space<vmem>>, %arg9: memref<24x512xf32, #tpu.memory_space<vmem>>) attributes {dimension_semantics = [#tpu.dimension_semantics<parallel>], iteration_bounds = array<i64: 2>, scalar_prefetch = 0 : i64, scratch_operands = 2 : i64, tpu.core_type = #tpu.core_type<tc>, window_params = [{pipeline_mode = #tpu.pipeline_mode<synchronous>, transform_indices = @transform_0, window_bounds = array<i64: 2, 256>}, {transform_indices = @transform_1, window_bounds = array<i64: 1, 8, 256>}, {pipeline_mode = #tpu.pipeline_mode<synchronous>, transform_indices = @transform_2, window_bounds = array<i64: 3, 8, 24>}, {pipeline_mode = #tpu.pipeline_mode<synchronous>, transform_indices = @transform_3, window_bounds = array<i64: 8, 1>}, {pipeline_mode = #tpu.pipeline_mode<synchronous>, transform_indices = @transform_4, window_bounds = array<i64: 3, 8, 24>}, {pipeline_mode = #tpu.pipeline_mode<synchronous>, transform_indices = @transform_5, window_bounds = array<i64: 8, 1>}, {transform_indices = @transform_6, window_bounds = array<i64: 1, 8, 256>}]} {
    %c0 = arith.constant 0 : index
    %c0_0 = arith.constant 0 : index
    %0 = vector.load %arg1[%c0, %c0_0] : memref<2x256xf32, #tpu.memory_space<vmem>>, vector<1x256xf32>
    %c1 = arith.constant 1 : index
    %c0_1 = arith.constant 0 : index
    %1 = vector.load %arg1[%c1, %c0_1] : memref<2x256xf32, #tpu.memory_space<vmem>>, vector<1x256xf32>
    %cst = arith.constant 0.000000e+00 : f32
    %2 = vector.broadcast %cst : f32 to vector<24x17xf32>
    %c0_2 = arith.constant 0 : index
    %c127 = arith.constant 127 : index
    %3 = vector.load %arg8[%c0_2, %c127] : memref<24x512xf32, #tpu.memory_space<vmem>>, vector<24x17xf32>
    tpu.vector_store %arg8[%c0_2, %c127], %2 {strides = array<i32>} : memref<24x512xf32, #tpu.memory_space<vmem>>, vector<24x17xf32>,
    %cst_3 = arith.constant 0.000000e+00 : f32
    %4 = vector.broadcast %cst_3 : f32 to vector<24x17xf32>
    %c0_4 = arith.constant 0 : index
    %c368 = arith.constant 368 : index
    %5 = vector.load %arg8[%c0_4, %c368] : memref<24x512xf32, #tpu.memory_space<vmem>>, vector<24x17xf32>
    tpu.vector_store %arg8[%c0_4, %c368], %4 {strides = array<i32>} : memref<24x512xf32, #tpu.memory_space<vmem>>, vector<24x17xf32>,
    %c0_5 = arith.constant 0 : index
    %c0_6 = arith.constant 0 : index
    %c0_7 = arith.constant 0 : index
    %6 = vector.load %arg2[%c0_5, %c0_6, %c0_7] : memref<1x8x256xf32, #tpu.memory_space<vmem>>, vector<1x8x256xf32>
    %7 = vector.shape_cast %6 : vector<1x8x256xf32> to vector<8x256xf32>
    %c0_8 = arith.constant 0 : index
    %c144 = arith.constant 144 : index
    %8 = vector.load %arg8[%c0_8, %c144] : memref<24x512xf32, #tpu.memory_space<vmem>>, vector<8x256xf32>
    tpu.vector_store %arg8[%c0_8, %c144], %7 {strides = array<i32>} : memref<24x512xf32, #tpu.memory_space<vmem>>, vector<8x256xf32>,
    %c8 = arith.constant 8 : index
    %c128 = arith.constant 128 : index
    %9 = vector.load %arg8[%c8, %c128] : memref<24x512xf32, #tpu.memory_space<vmem>>, vector<8x256xf32>
    tpu.vector_store %arg8[%c8, %c128], %7 {strides = array<i32>} : memref<24x512xf32, #tpu.memory_space<vmem>>, vector<8x256xf32>,
    %c16 = arith.constant 16 : index
    %c112 = arith.constant 112 : index
    %10 = vector.load %arg8[%c16, %c112] : memref<24x512xf32, #tpu.memory_space<vmem>>, vector<8x256xf32>
    tpu.vector_store %arg8[%c16, %c112], %7 {strides = array<i32>} : memref<24x512xf32, #tpu.memory_space<vmem>>, vector<8x256xf32>,
    %c0_9 = arith.constant 0 : index
    %c0_10 = arith.constant 0 : index
    %c0_11 = arith.constant 0 : index
    %11 = vector.load %arg3[%c0_9, %c0_10, %c0_11] : memref<3x8x24xbf16, #tpu.memory_space<vmem>>, vector<1x8x24xbf16>
    %12 = vector.shape_cast %11 : vector<1x8x24xbf16> to vector<8x24xbf16>
    %c0_12 = arith.constant 0 : index
    %c127_13 = arith.constant 127 : index
    %13 = vector.load %arg8[%c0_12, %c127_13] : memref<24x512xf32, #tpu.memory_space<vmem>>, vector<24x256xf32>
    %14 = arith.truncf %13 : vector<24x256xf32> to vector<24x256xbf16>
    %cst_14 = arith.constant dense<0.000000e+00> : vector<8x256xf32>
    %15 = tpu.matmul %12, %14, %cst_14 {dimension_numbers = #tpu.dot_dimension_numbers<[1], [0], [0], [1], [0, 0, 1, 1], [], []>} : vector<8x24xbf16>, vector<24x256xbf16>, vector<8x256xf32> -> vector<8x256xf32>
    %c1_15 = arith.constant 1 : index
    %c0_16 = arith.constant 0 : index
    %c0_17 = arith.constant 0 : index
    %16 = vector.load %arg3[%c1_15, %c0_16, %c0_17] : memref<3x8x24xbf16, #tpu.memory_space<vmem>>, vector<1x8x24xbf16>
    %17 = vector.shape_cast %16 : vector<1x8x24xbf16> to vector<8x24xbf16>
    %c0_18 = arith.constant 0 : index
    %c128_19 = arith.constant 128 : index
    %18 = vector.load %arg8[%c0_18, %c128_19] : memref<24x512xf32, #tpu.memory_space<vmem>>, vector<24x256xf32>
    %19 = arith.truncf %18 : vector<24x256xf32> to vector<24x256xbf16>
    %cst_20 = arith.constant dense<0.000000e+00> : vector<8x256xf32>
    %20 = tpu.matmul %17, %19, %cst_20 {dimension_numbers = #tpu.dot_dimension_numbers<[1], [0], [0], [1], [0, 0, 1, 1], [], []>} : vector<8x24xbf16>, vector<24x256xbf16>, vector<8x256xf32> -> vector<8x256xf32>
    %c2 = arith.constant 2 : index
    %c0_21 = arith.constant 0 : index
    %c0_22 = arith.constant 0 : index
    %21 = vector.load %arg3[%c2, %c0_21, %c0_22] : memref<3x8x24xbf16, #tpu.memory_space<vmem>>, vector<1x8x24xbf16>
    %22 = vector.shape_cast %21 : vector<1x8x24xbf16> to vector<8x24xbf16>
    %c0_23 = arith.constant 0 : index
    %c129 = arith.constant 129 : index
    %23 = vector.load %arg8[%c0_23, %c129] : memref<24x512xf32, #tpu.memory_space<vmem>>, vector<24x256xf32>
    %24 = arith.truncf %23 : vector<24x256xf32> to vector<24x256xbf16>
    %cst_24 = arith.constant dense<0.000000e+00> : vector<8x256xf32>
    %25 = tpu.matmul %22, %24, %cst_24 {dimension_numbers = #tpu.dot_dimension_numbers<[1], [0], [0], [1], [0, 0, 1, 1], [], []>} : vector<8x24xbf16>, vector<24x256xbf16>, vector<8x256xf32> -> vector<8x256xf32>
    %26 = vector.broadcast %0 : vector<1x256xf32> to vector<8x256xf32>
    %27 = arith.mulf %26, %15 : vector<8x256xf32>
    %28 = arith.addf %20, %27 : vector<8x256xf32>
    %29 = vector.broadcast %1 : vector<1x256xf32> to vector<8x256xf32>
    %30 = arith.mulf %29, %25 : vector<8x256xf32>
    %31 = arith.addf %28, %30 : vector<8x256xf32>
    %c0_25 = arith.constant 0 : index
    %c0_26 = arith.constant 0 : index
    %32 = vector.load %arg4[%c0_25, %c0_26] : memref<8x1xf32, #tpu.memory_space<vmem>>, vector<8x1xf32>
    %33 = vector.broadcast %32 : vector<8x1xf32> to vector<8x256xf32>
    %34 = arith.addf %31, %33 : vector<8x256xf32>
    %cst_27 = arith.constant 0.000000e+00 : f32
    %35 = vector.broadcast %cst_27 : f32 to vector<8x256xf32>
    %36 = arith.maximumf %34, %35 : vector<8x256xf32>
    %cst_28 = arith.constant 0.000000e+00 : f32
    %37 = vector.broadcast %cst_28 : f32 to vector<24x17xf32>
    %c0_29 = arith.constant 0 : index
    %c127_30 = arith.constant 127 : index
    %38 = vector.load %arg9[%c0_29, %c127_30] : memref<24x512xf32, #tpu.memory_space<vmem>>, vector<24x17xf32>
    tpu.vector_store %arg9[%c0_29, %c127_30], %37 {strides = array<i32>} : memref<24x512xf32, #tpu.memory_space<vmem>>, vector<24x17xf32>,
    %cst_31 = arith.constant 0.000000e+00 : f32
    %39 = vector.broadcast %cst_31 : f32 to vector<24x17xf32>
    %c0_32 = arith.constant 0 : index
    %c368_33 = arith.constant 368 : index
    %40 = vector.load %arg9[%c0_32, %c368_33] : memref<24x512xf32, #tpu.memory_space<vmem>>, vector<24x17xf32>
    tpu.vector_store %arg9[%c0_32, %c368_33], %39 {strides = array<i32>} : memref<24x512xf32, #tpu.memory_space<vmem>>, vector<24x17xf32>,
    %c0_34 = arith.constant 0 : index
    %c144_35 = arith.constant 144 : index
    %41 = vector.load %arg9[%c0_34, %c144_35] : memref<24x512xf32, #tpu.memory_space<vmem>>, vector<8x256xf32>
    tpu.vector_store %arg9[%c0_34, %c144_35], %36 {strides = array<i32>} : memref<24x512xf32, #tpu.memory_space<vmem>>, vector<8x256xf32>,
    %c8_36 = arith.constant 8 : index
    %c128_37 = arith.constant 128 : index
    %42 = vector.load %arg9[%c8_36, %c128_37] : memref<24x512xf32, #tpu.memory_space<vmem>>, vector<8x256xf32>
    tpu.vector_store %arg9[%c8_36, %c128_37], %36 {strides = array<i32>} : memref<24x512xf32, #tpu.memory_space<vmem>>, vector<8x256xf32>,
    %c16_38 = arith.constant 16 : index
    %c112_39 = arith.constant 112 : index
    %43 = vector.load %arg9[%c16_38, %c112_39] : memref<24x512xf32, #tpu.memory_space<vmem>>, vector<8x256xf32>
    tpu.vector_store %arg9[%c16_38, %c112_39], %36 {strides = array<i32>} : memref<24x512xf32, #tpu.memory_space<vmem>>, vector<8x256xf32>,
    %c0_40 = arith.constant 0 : index
    %c0_41 = arith.constant 0 : index
    %c0_42 = arith.constant 0 : index
    %44 = vector.load %arg5[%c0_40, %c0_41, %c0_42] : memref<3x8x24xbf16, #tpu.memory_space<vmem>>, vector<1x8x24xbf16>
    %45 = vector.shape_cast %44 : vector<1x8x24xbf16> to vector<8x24xbf16>
    %c0_43 = arith.constant 0 : index
    %c127_44 = arith.constant 127 : index
    %46 = vector.load %arg9[%c0_43, %c127_44] : memref<24x512xf32, #tpu.memory_space<vmem>>, vector<24x256xf32>
    %47 = arith.truncf %46 : vector<24x256xf32> to vector<24x256xbf16>
    %cst_45 = arith.constant dense<0.000000e+00> : vector<8x256xf32>
    %48 = tpu.matmul %45, %47, %cst_45 {dimension_numbers = #tpu.dot_dimension_numbers<[1], [0], [0], [1], [0, 0, 1, 1], [], []>} : vector<8x24xbf16>, vector<24x256xbf16>, vector<8x256xf32> -> vector<8x256xf32>
    %c1_46 = arith.constant 1 : index
    %c0_47 = arith.constant 0 : index
    %c0_48 = arith.constant 0 : index
    %49 = vector.load %arg5[%c1_46, %c0_47, %c0_48] : memref<3x8x24xbf16, #tpu.memory_space<vmem>>, vector<1x8x24xbf16>
    %50 = vector.shape_cast %49 : vector<1x8x24xbf16> to vector<8x24xbf16>
    %c0_49 = arith.constant 0 : index
    %c128_50 = arith.constant 128 : index
    %51 = vector.load %arg9[%c0_49, %c128_50] : memref<24x512xf32, #tpu.memory_space<vmem>>, vector<24x256xf32>
    %52 = arith.truncf %51 : vector<24x256xf32> to vector<24x256xbf16>
    %cst_51 = arith.constant dense<0.000000e+00> : vector<8x256xf32>
    %53 = tpu.matmul %50, %52, %cst_51 {dimension_numbers = #tpu.dot_dimension_numbers<[1], [0], [0], [1], [0, 0, 1, 1], [], []>} : vector<8x24xbf16>, vector<24x256xbf16>, vector<8x256xf32> -> vector<8x256xf32>
    %c2_52 = arith.constant 2 : index
    %c0_53 = arith.constant 0 : index
    %c0_54 = arith.constant 0 : index
    %54 = vector.load %arg5[%c2_52, %c0_53, %c0_54] : memref<3x8x24xbf16, #tpu.memory_space<vmem>>, vector<1x8x24xbf16>
    %55 = vector.shape_cast %54 : vector<1x8x24xbf16> to vector<8x24xbf16>
    %c0_55 = arith.constant 0 : index
    %c129_56 = arith.constant 129 : index
    %56 = vector.load %arg9[%c0_55, %c129_56] : memref<24x512xf32, #tpu.memory_space<vmem>>, vector<24x256xf32>
    %57 = arith.truncf %56 : vector<24x256xf32> to vector<24x256xbf16>
    %cst_57 = arith.constant dense<0.000000e+00> : vector<8x256xf32>
    %58 = tpu.matmul %55, %57, %cst_57 {dimension_numbers = #tpu.dot_dimension_numbers<[1], [0], [0], [1], [0, 0, 1, 1], [], []>} : vector<8x24xbf16>, vector<24x256xbf16>, vector<8x256xf32> -> vector<8x256xf32>
    %59 = vector.broadcast %0 : vector<1x256xf32> to vector<8x256xf32>
    %60 = arith.mulf %59, %48 : vector<8x256xf32>
    %61 = arith.addf %53, %60 : vector<8x256xf32>
    %62 = vector.broadcast %1 : vector<1x256xf32> to vector<8x256xf32>
    %63 = arith.mulf %62, %58 : vector<8x256xf32>
    %64 = arith.addf %61, %63 : vector<8x256xf32>
    %c0_58 = arith.constant 0 : index
    %c0_59 = arith.constant 0 : index
    %65 = vector.load %arg6[%c0_58, %c0_59] : memref<8x1xf32, #tpu.memory_space<vmem>>, vector<8x1xf32>
    %66 = vector.broadcast %65 : vector<8x1xf32> to vector<8x256xf32>
    %67 = arith.addf %64, %66 : vector<8x256xf32>
    %cst_60 = arith.constant 0.000000e+00 : f32
    %68 = vector.broadcast %cst_60 : f32 to vector<8x256xf32>
    %69 = arith.maximumf %67, %68 : vector<8x256xf32>
    %c0_61 = arith.constant 0 : index
    %c0_62 = arith.constant 0 : index
    %c0_63 = arith.constant 0 : index
    %70 = vector.load %arg7[%c0_61, %c0_62, %c0_63] : memref<1x8x256xf32, #tpu.memory_space<vmem>>, vector<1x8x256xf32>
    %71 = vector.shape_cast %70 : vector<1x8x256xf32> to vector<8x256xf32>
    %72 = vector.shape_cast %69 : vector<8x256xf32> to vector<1x8x256xf32>
    tpu.vector_store %arg7[%c0_61, %c0_62, %c0_63], %72 {strides = array<i32>} : memref<1x8x256xf32, #tpu.memory_space<vmem>>, vector<1x8x256xf32>,
    return
  }
  func.func @transform_0(%arg0: i32) -> (i32, i32) {
    %c0_i32 = arith.constant 0 : i32
    %c0_i32_0 = arith.constant 0 : i32
    %c0_i32_1 = arith.constant 0 : i32
    return %c0_i32, %c0_i32_0 : i32, i32
  }
  func.func @transform_1(%arg0: i32) -> (i32, i32, i32) {
    %c0_i32 = arith.constant 0 : i32
    %c0_i32_0 = arith.constant 0 : i32
    %c0_i32_1 = arith.constant 0 : i32
    return %arg0, %c0_i32, %c0_i32_0 : i32, i32, i32
  }
  func.func @transform_2(%arg0: i32) -> (i32, i32, i32) {
    %c0_i32 = arith.constant 0 : i32
    %c0_i32_0 = arith.constant 0 : i32
    %c0_i32_1 = arith.constant 0 : i32
    %c0_i32_2 = arith.constant 0 : i32
    return %c0_i32, %c0_i32_0, %c0_i32_1 : i32, i32, i32
  }
  func.func @transform_3(%arg0: i32) -> (i32, i32) {
    %c0_i32 = arith.constant 0 : i32
    %c0_i32_0 = arith.constant 0 : i32
    %c0_i32_1 = arith.constant 0 : i32
    return %c0_i32, %c0_i32_0 : i32, i32
  }
  func.func @transform_4(%arg0: i32) -> (i32, i32, i32) {
    %c0_i32 = arith.constant 0 : i32
    %c0_i32_0 = arith.constant 0 : i32
    %c0_i32_1 = arith.constant 0 : i32
    %c0_i32_2 = arith.constant 0 : i32
    return %c0_i32, %c0_i32_0, %c0_i32_1 : i32, i32, i32
  }
  func.func @transform_5(%arg0: i32) -> (i32, i32) {
    %c0_i32 = arith.constant 0 : i32
    %c0_i32_0 = arith.constant 0 : i32
    %c0_i32_1 = arith.constant 0 : i32
    return %c0_i32, %c0_i32_0 : i32, i32
  }
  func.func @transform_6(%arg0: i32) -> (i32, i32, i32) {
    %c0_i32 = arith.constant 0 : i32
    %c0_i32_0 = arith.constant 0 : i32
    %c0_i32_1 = arith.constant 0 : i32
    return %arg0, %c0_i32, %c0_i32_0 : i32, i32, i32
  }
}

</mosaic_0001>

<bundles_post_ra>
// kernel: up_forward.1
= control target key start
LH: loop header
LB: loop body
LE: loop exit
PB: predicated region body
PF: predicated region fallthrough
CT: control target
= control target key end

     0   :  { %s1015_s21 = smov 0   ;;  %s1186_s0 = inlined_call_operand.vmem [shape: f32[2,256], index: 0, kind: input, shape index: {}]   ;;  %s1187_s1 = inlined_call_operand.vmem [shape: f32[2,8,256], index: 1, kind: input, shape index: {}]   ;;  %s1188_s2 = inlined_call_operand.vmem [shape: bf16[3,8,24], index: 2, kind: input, shape index: {}]   ;;  %s1189_s3 = inlined_call_operand.vmem [shape: f32[8,1], index: 3, kind: input, shape index: {}]   ;;  %s1190_s4 = inlined_call_operand.vmem [shape: bf16[3,8,24], index: 4, kind: input, shape index: {}]   ;;  %s1191_s5 = inlined_call_operand.vmem [shape: f32[8,1], index: 5, kind: input, shape index: {}]   ;;  %s1192_s6 = inlined_call_operand.vmem [shape: f32[2,8,256], index: 6, kind: output, shape index: {}]  }
   0x1 LB: > { %s921_s22 = sadd.s32 4294967295, %s972_s21   ;;  %p925_p0 = scmp.ge.s32.totalorder %s972_s21, 1  ;;  %s972_s21 = sphi %s1015_s21, %s16_s21  }
   0x2   : > { %p212_p1 = scmp.lt.s32.totalorder %s972_s21, 3 }
   0x4   : > { %p213_p2 = pnand %p925_p0, %p212_p1 }
   0x5   : > { %p1023_p3 = scmp.lt.s32.totalorder (!%p213_p2), %s921_s22, 1  ;;  %vm258_vm0 = vcmask (!%p213_p2), 130048   ;;  %vm264_vm1 = vcmask (!%p213_p2), 1048448   ;;  %vm256_vm2 = vcmask (!%p213_p2), 1048568   ;;  %v974_v0 = vmov (!%p213_p2), 0.0   ;;  %s975_s28 = smov (!%p213_p2), 112  }
   0x6   : > { %216 = sbr.rel (%p213_p2) target bundleno = 993 (0x3e1), region = 44  ;;  %259 = vst.msk [vmem:[#allocation2 + $0x8] sm:$0xff] (!%p213_p2), %vm258_vm0, %v974_v0  ;;  %578 = vst.msk [vmem:[#allocation3 + $0x8] sm:$0xff] (!%p213_p2), %vm258_vm0, %v974_v0  ;;  %vm266_vm3 = vcmask (!%p213_p2), 7168   ;;  %s976_s29 = smov (!%p213_p2), 16   ;;  %vm284_vm4 = vcmask (!%p213_p2), 1047680   ;;  %v490_v53 = vlaneseq (!%p213_p2) }
   0x7   : > { %270 = vst.msk [vmem:[#allocation2 + $0x50] sm:$0xff] (!%p213_p2), %vm264_vm1, %v974_v0  ;;  %587 = vst.msk [vmem:[#allocation3 + $0x50] sm:$0xff] (!%p213_p2), %vm264_vm1, %v974_v0  ;;  %s977_s30 = smov (!%p213_p2), 1   ;;  %vm294_vm5 = vcmask (!%p213_p2), 916480   ;;  %v978_v18 = vmov (!%p213_p2), 0   ;;  %s979_s7 = smov (!%p213_p2), 127  }
   0x8   : > { %257 = vst.msk [vmem:[#allocation2] sm:$0xff] (!%p213_p2), %vm256_vm2, %v974_v0  ;;  %260 = vst.msk [vmem:[#allocation2 + $0x20] sm:$0xff] (!%p213_p2), %vm256_vm2, %v974_v0  ;;  %386 = vmatprep.mubr.bf16.mxu0 (!%p213_p2), %v978_v18  ;;  %480 = vmatprep.mubr.bf16.mxu1 (!%p213_p2), %v978_v18  ;;  %v567_v26 = vld [vmem:[%s1189_s3] sm:$0xff] (!%p213_p2)  ;;  %vm432_vm6 = vcmask (!%p213_p2), 1039360   ;;  %vm347_vm7 = vcmask (!%p213_p2), 1043456   ;;  %vm343_vm8 = vcmask (!%p213_p2), 195584  }
   0x9   : > { %262 = vst.msk [vmem:[#allocation2 + $0x40] sm:$0xff] (!%p213_p2), %vm256_vm2, %v974_v0  ;;  %577 = vst.msk [vmem:[#allocation3] sm:$0xff] (!%p213_p2), %vm256_vm2, %v974_v0  ;;  %965 = vset.pattern.permute.xlu0 (!%p213_p2), %v978_v18  ;;  %v302_v43 = vld [vmem:[%s1188_s2] sm:$0xf] (!%p213_p2)  ;;  %v934_v51 = vld [vmem:[%s1188_s2 + $0x8] sm:$0xf] (!%p213_p2) }
   0xa   : > { %579 = vst.msk [vmem:[#allocation3 + $0x20] sm:$0xff] (!%p213_p2), %vm256_vm2, %v974_v0  ;;  %581 = vst.msk [vmem:[#allocation3 + $0x40] sm:$0xff] (!%p213_p2), %vm256_vm2, %v974_v0  ;;  %v933_v52 = vld [vmem:[%s1188_s2 + $0x4] sm:$0xf] (!%p213_p2)  ;;  %v491_v54 = vshrl.u32 (!%p213_p2), %v490_v53, 7 }
   0xb   : > { %267 = vst.msk [vmem:[#allocation2 + $0x18] sm:$0xff] (!%p213_p2), %vm266_vm3, %v974_v0  ;;  %269 = vst.msk [vmem:[#allocation2 + $0x38] sm:$0xff] (!%p213_p2), %vm266_vm3, %v974_v0  ;;  %v253_v56 = vld [vmem:[%s1186_s0] ss:$2 sm:$0x3] (!%p213_p2) }
   0xc   : > { %271 = vst.msk [vmem:[#allocation2 + $0x58] sm:$0xff] (!%p213_p2), %vm266_vm3, %v974_v0  ;;  %584 = vst.msk [vmem:[#allocation3 + $0x18] sm:$0xff] (!%p213_p2), %vm266_vm3, %v974_v0  ;;  %v492_v55 = vsub.s32 (!%p213_p2), 0, %v491_v54  ;;  %v496_v58 = vsub.s32 (!%p213_p2), 1, %v491_v54 }
   0xd   : > { %s1195_s22 = smov (!%p1023_p3, %s921_s22), 1  ;;  %586 = vst.msk [vmem:[#allocation3 + $0x38] sm:$0xff] %vm266_vm3, %v974_v0  ;;  %588 = vst.msk [vmem:[#allocation3 + $0x58] sm:$0xff] %vm266_vm3, %v974_v0  ;;  %v930_v61 = vld [vmem:[%s1186_s0 + $0x1] ss:$2 sm:$0x3] }
   0xe   : > { %s949_s24 = sshll.u32 %s1195_s22, 4  ;;  %v1110_v62 = vrot.slane %v253_v56, %v492_v55  ;;  %v1112_v0 = vrot.slane %v253_v56, %v496_v58 }
   0xf   : > { %s246_s27 = scalar_lea.vmem %s1187_s1, %s949_s24  ;;  %v303_v3 = vld [vmem:[#allocation2] sm:$0xff]  ;;  %s251_s9 = scalar_lea.vmem %s1192_s6, %s949_s24 }
  0x10   : > { %v272_v1 = vld [vmem:[%s246_s27] sm:$0xff]  ;;  %v273_v2 = vld [vmem:[%s246_s27 + $0x8] sm:$0xff] }
  0x11   : > { %290 = vrot.lane.b32.xlu1 %v272_v1, %s975_s28  ;;  %276 = vrot.lane.b32.xlu0 %v272_v1, %s976_s29  ;;  %v306_v4 = vld [vmem:[#allocation2 + $0x20] sm:$0xff] }
  0x12   : > { %v312_v5 = vpack.c.bf16 %v306_v4, %v303_v3  ;;  %v404_v20 = vld [vmem:[#allocation2 + $0x38] sm:$0xff] }
  0x13   : > { %v407_v24 = vld [vmem:[#allocation2 + $0x58] sm:$0xff] }
  0x14   : > { %v413_v25 = vpack.c.bf16 %v407_v24, %v407_v24  ;;  %v619_v24 = vld [vmem:[#allocation3 + $0x20] sm:$0xff] }
  0x15   : > { %292 = vrot.lane.b32.xlu1 %v273_v2, %s975_s28  ;;  %278 = vrot.lane.b32.xlu0 %v273_v2, %s976_s29 }
  0x19   : > { %324 = vrot.lane.b32.xlu0 %v312_v5, %s977_s30 }
  0x83   : > { %v291_v6 = vpop.permute.xlu1 %290  ;;  %v277_v7 = vpop.permute.xlu0 %276 }
  0x84   : > { %299 = vst.msk [vmem:[#allocation2 + $0x40] sm:$0xff] %vm264_vm1, %v291_v6 }
  0x85   : > { %285 = vst.msk [vmem:[#allocation2 + $0x8] sm:$0xff] %vm284_vm4, %v277_v7 }
  0x87   : > { %v293_v8 = vpop.permute.xlu1 %292  ;;  %v279_v9 = vpop.permute.xlu0 %278 }
  0x88   : > { %v295_v10 = vsel %vm294_vm5, %v291_v6, %v293_v8  ;;  %301 = vst.msk [vmem:[#allocation2 + $0x50] sm:$0xff] %vm294_vm5, %v293_v8  ;;  %v280_v11 = vsel %vm258_vm0, %v277_v7, %v279_v9 }
  0x89   : > { %287 = vst.msk [vmem:[#allocation2 + $0x18] sm:$0xff] %vm258_vm0, %v279_v9  ;;  %v314_v21 = vpack.c.bf16 %v273_v2, %v280_v11  ;;  %v316_v22 = vpack.c.bf16 %v295_v10, %v295_v10  ;;  %v1116_v2 = vrot.slane %v930_v61, %v496_v58 }
  0x8b   : > { %v309_v12 = vld [vmem:[#allocation2 + $0x40] sm:$0xff]  ;;  %v325_v27 = vpop.permute.xlu0 %324  ;;  %v506_v50 = vsel %vm347_vm7, %v316_v22, 0 }
  0x8c   : > { %v304_v13 = vld [vmem:[#allocation2 + $0x8] sm:$0xff]  ;;  %v315_v14 = vpack.c.bf16 %v309_v12, %v309_v12 }
  0x8d   : > { %v313_v15 = vpack.c.bf16 %v272_v1, %v304_v13  ;;  %v1114_v1 = vrot.slane %v930_v61, %v492_v55 }
  0x8e   : > { %330 = vrot.lane.b32.xlu1 %v315_v14, %s977_s30 }
  0x8f   : > { %326 = vrot.lane.b32.xlu0 %v313_v15, %s977_s30  ;;  %v311_v16 = vld [vmem:[#allocation2 + $0x50] sm:$0xff] }
  0x90   : > { %v317_v17 = vpack.c.bf16 %v311_v16, %v311_v16  ;;  %v401_v19 = vld [vmem:[#allocation2 + $0x18] sm:$0xff] }
  0x91   : > { %v410_v23 = vpack.c.bf16 %v404_v20, %v401_v19 }
  0x92   : > { %334 = vrot.lane.b32.xlu1 %v317_v17, %s977_s30 }
  0x93   : > { %420 = vrot.lane.b32.xlu0 %v313_v15, %s979_s7 }
  0x96   : > { %328 = vrot.lane.b32.xlu1 %v314_v21, %s977_s30 }
  0x97   : > { %332 = vrot.lane.b32.xlu0 %v316_v22, %s977_s30 }
  0x9a   : > { %424 = vrot.lane.b32.xlu1 %v410_v23, %s979_s7  ;;  %v616_v23 = vld [vmem:[#allocation3] sm:$0xff] }
  0x9b   : > { %422 = vrot.lane.b32.xlu0 %v314_v21, %s979_s7 }
  0x9e   : > { %426 = vrot.lane.b32.xlu1 %v316_v22, %s979_s7 }
  0x9f   : > { %428 = vrot.lane.b32.xlu0 %v317_v17, %s979_s7 }
  0xa2   : > { %430 = vrot.lane.b32.xlu1 %v413_v25, %s979_s7 }
  0xa3   : > { %570 = vperm.xlu0 %965, %v567_v26  }
 0x100   : > { %v331_v28 = vpop.permute.xlu1 %330 }
 0x101   : > { %v327_v29 = vpop.permute.xlu0 %326 }
 0x102   : > { %v337_v35 = vsel %vm266_vm3, %v325_v27, %v327_v29  ;;  %v625_v27 = vpack.c.bf16 %v619_v24, %v616_v23 }
 0x104   : > { %v335_v30 = vpop.permute.xlu1 %334 }
 0x105   : > { %v421_v31 = vpop.permute.xlu0 %420 }
 0x108   : > { %v329_v32 = vpop.permute.xlu1 %328 }
 0x109   : > { %v333_v33 = vpop.permute.xlu0 %332  ;;  %v338_v34 = vsel %vm266_vm3, %v327_v29, %v329_v32 }
 0x10a   : > { %354 = vmatprep.subr.bf16.mxu0 %v338_v34  ;;  %v339_v36 = vsel %vm266_vm3, %v331_v28, %v333_v33  ;;  %v340_v37 = vsel %vm266_vm3, %v333_v33, %v335_v30 }
 0x10b   : > { %355 = vmatpush1.bf16.msra.mxu0 %v337_v35  ;;  %v349_v42 = vsel %vm347_vm7, %v339_v36, 0 }
 0x10c   : > { %v425_v38 = vpop.permute.xlu1 %424  ;;  %931 = vmatprep.subr.msk.bf16.mxu0 %vm347_vm7, %v340_v37 }
 0x10d   : > { %v423_v39 = vpop.permute.xlu0 %422 }
 0x10e   : > { %v434_v40 = vsel %vm432_vm6, %v423_v39, %v425_v38  ;;  %v433_v41 = vsel %vm432_vm6, %v421_v31, %v423_v39 }
 0x10f   : > { %448 = vmatprep.subr.bf16.mxu1 %v434_v40  ;;  %357 = vmatpush1.bf16.msra.mxu0 %v349_v42 }
 0x110   : > { %449 = vmatpush1.bf16.msra.mxu1 %v433_v41  ;;  %v427_v44 = vpop.permute.xlu1 %426  ;;  %511 = vmatprep.subr.bf16.mxu0 %v314_v21 }
 0x111   : > { %v429_v45 = vpop.permute.xlu0 %428 }
 0x112   : > { %932 = vmatmul.mubr.msk.bf16.vlgmr.msra.gmra.mrb[0].mxu0 %vm343_vm8, %v302_v43  ;;  %v435_v46 = vsel %vm432_vm6, %v427_v44, %v429_v45  ;;  %v714_v43 = vld [vmem:[#allocation3 + $0x38] sm:$0xff] }
 0x113   : > { %512 = vmatpush1.bf16.msra.mxu0 %v313_v15  ;;  %543 = vmatprep.mubr.bf16.mxu0 %v978_v18  ;;  %v443_v49 = vsel %vm347_vm7, %v435_v46, 0  ;;  %v717_v46 = vld [vmem:[#allocation3 + $0x58] sm:$0xff] }
 0x114   : > { %v431_v47 = vpop.permute.xlu1 %430  ;;  %937 = vmatprep.subr.msk.bf16.mxu0 %vm347_vm7, %v317_v17 }
 0x115   : > { %v436_v48 = vsel %vm432_vm6, %v429_v45, %v431_v47  ;;  %v854_v45 = vld [vmem:[%s1191_s5] sm:$0xff]  ;;  %v723_v47 = vpack.c.bf16 %v717_v46, %v717_v46 }
 0x116   : > { %935 = vmatprep.subr.msk.bf16.mxu1 %vm347_vm7, %v436_v48 }
 0x117   : > { %451 = vmatpush1.bf16.msra.mxu1 %v443_v49  ;;  %514 = vmatpush1.bf16.msra.mxu0 %v506_v50 }
 0x11a   : > { %936 = vmatmul.mubr.msk.bf16.vlgmr.msra.gmra.mrb[0].mxu1 %vm343_vm8, %v934_v51  ;;  %938 = vmatmul.mubr.msk.bf16.vlgmr.msra.gmra.mrb[4].mxu0 %vm343_vm8, %v933_v52 }
 0x11b   : > { %696 = vmatprep.mubr.bf16.mxu1 %v978_v18  ;;  %789 = vmatprep.mubr.bf16.mxu0 %v978_v18 }
 0x122   : > { %v571_v4 = vpop.permute.xlu0 %570 }
 0x1e5   : > { %v388_v57 = vpop.f32.mrb[0].mxu0 }
 0x1e6   : > { %v390_v59 = vpop.f32.mrb[1].mxu0  ;;  %v500_v3 = vmul.f32 %v1110_v62, %v388_v57 }
 0x1e7   : > { %v392_v60 = vpop.f32.mrb[2].mxu0  ;;  %v501_v5 = vmul.f32 %v1112_v0, %v390_v59 }
 0x1e8   : > { %v393_v63 = vpop.f32.mrb[3].mxu0 }
 0x1ed   : > { %v482_v6 = vpop.f32.mrb[0].mxu1  ;;  %v545_v7 = vpop.f32.mrb[4].mxu0 }
 0x1ee   : > { %v563_v8 = vmul.f32 %v1114_v1, %v482_v6  ;;  %v546_v9 = vadd.f32 %v545_v7, %v500_v3  ;;  %v484_v10 = vpop.f32.mrb[1].mxu1  ;;  %v547_v11 = vpop.f32.mrb[5].mxu0 }
 0x1ef   : > { %v564_v12 = vmul.f32 %v1116_v2, %v484_v10  ;;  %v548_v13 = vadd.f32 %v547_v11, %v501_v5  ;;  %v486_v14 = vpop.f32.mrb[2].mxu1  ;;  %v549_v15 = vpop.f32.mrb[6].mxu0 }
 0x1f0   : > { %v565_v16 = vadd.f32 %v563_v8, %v546_v9  ;;  %v487_v17 = vpop.f32.mrb[3].mxu1  ;;  %v550_v19 = vpop.f32.mrb[7].mxu0 }
 0x1f1   : > { %v566_v20 = vadd.f32 %v564_v12, %v548_v13  ;;  %v942_v12 = vld [vmem:[%s1190_s4 + $0x8] sm:$0xf] }
 0x1f2   : > { %v573_v21 = vadd.f32 %v571_v4, %v565_v16 }
 0x1f3   : > { %v574_v22 = vadd.f32 %v571_v4, %v566_v20  ;;  %v615_v4 = vld [vmem:[%s1190_s4] sm:$0xf] }
 0x1f4   : > { %v575_v25 = vmax.f32 %v573_v21, 0.0 }
 0x1f5   : > { %v576_v26 = vmax.f32 %v574_v22, 0.0 }
 0x1f6   : > { %604 = vrot.lane.b32.xlu0 %v575_v25, %s975_s28  ;;  %591 = vrot.lane.b32.xlu1 %v575_v25, %s976_s29 }
 0x1fa   : > { %593 = vrot.lane.b32.xlu1 %v576_v26, %s976_s29  ;;  %637 = vrot.lane.b32.xlu0 %v625_v27, %s977_s30 }
 0x1fe   : > { %606 = vrot.lane.b32.xlu1 %v576_v26, %s975_s28 }
 0x268   : > { %v605_v28 = vpop.permute.xlu0 %604  ;;  %v592_v29 = vpop.permute.xlu1 %591 }
 0x269   : > { %612 = vst.msk [vmem:[#allocation3 + $0x40] sm:$0xff] %vm264_vm1, %v605_v28 }
 0x26a   : > { %599 = vst.msk [vmem:[#allocation3 + $0x8] sm:$0xff] %vm284_vm4, %v592_v29 }
 0x26c   : > { %v594_v30 = vpop.permute.xlu1 %593  ;;  %v638_v48 = vpop.permute.xlu0 %637 }
 0x26d   : > { %v595_v31 = vsel %vm258_vm0, %v592_v29, %v594_v30  ;;  %601 = vst.msk [vmem:[#allocation3 + $0x18] sm:$0xff] %vm258_vm0, %v594_v30 }
 0x26e   : > { %v627_v41 = vpack.c.bf16 %v576_v26, %v595_v31 }
 0x270   : > { %v607_v32 = vpop.permute.xlu1 %606  ;;  %v622_v33 = vld [vmem:[#allocation3 + $0x40] sm:$0xff] }
 0x271   : > { %v617_v34 = vld [vmem:[#allocation3 + $0x8] sm:$0xff]  ;;  %v608_v35 = vsel %vm294_vm5, %v605_v28, %v607_v32  ;;  %614 = vst.msk [vmem:[#allocation3 + $0x50] sm:$0xff] %vm294_vm5, %v607_v32  ;;  %v628_v36 = vpack.c.bf16 %v622_v33, %v622_v33 }
 0x272   : > { %v626_v37 = vpack.c.bf16 %v575_v25, %v617_v34  ;;  %v629_v40 = vpack.c.bf16 %v608_v35, %v608_v35 }
 0x273   : > { %643 = vrot.lane.b32.xlu1 %v628_v36, %s977_s30 }
 0x274   : > { %639 = vrot.lane.b32.xlu0 %v626_v37, %s977_s30  ;;  %v711_v42 = vld [vmem:[#allocation3 + $0x18] sm:$0xff]  ;;  %v804_v11 = vsel %vm347_vm7, %v629_v40, 0 }
 0x275   : > { %v720_v44 = vpack.c.bf16 %v714_v43, %v711_v42 }
 0x278   : > { %730 = vrot.lane.b32.xlu0 %v626_v37, %s979_s7  ;;  %v624_v38 = vld [vmem:[#allocation3 + $0x50] sm:$0xff] }
 0x279   : > { %v630_v39 = vpack.c.bf16 %v624_v38, %v624_v38 }
 0x27b   : > { %647 = vrot.lane.b32.xlu1 %v630_v39, %s977_s30 }
 0x27c   : > { %645 = vrot.lane.b32.xlu0 %v629_v40, %s977_s30 }
 0x27f   : > { %641 = vrot.lane.b32.xlu1 %v627_v41, %s977_s30 }
 0x280   : > { %732 = vrot.lane.b32.xlu0 %v627_v41, %s979_s7 }
 0x283   : > { %734 = vrot.lane.b32.xlu1 %v720_v44, %s979_s7 }
 0x284   : > { %738 = vrot.lane.b32.xlu0 %v630_v39, %s979_s7 }
 0x287   : > { %736 = vrot.lane.b32.xlu1 %v629_v40, %s979_s7 }
 0x288   : > { %857 = vperm.xlu0 %965, %v854_v45  }
 0x28b   : > { %740 = vrot.lane.b32.xlu1 %v723_v47, %s979_s7 }
 0x2e5   : > { %v644_v50 = vpop.permute.xlu1 %643 }
 0x2e6   : > { %v640_v49 = vpop.permute.xlu0 %639 }
 0x2e7   : > { %v649_v56 = vsel %vm266_vm3, %v638_v48, %v640_v49 }
 0x2ea   : > { %v731_v51 = vpop.permute.xlu0 %730 }
 0x2ed   : > { %v648_v52 = vpop.permute.xlu1 %647 }
 0x2ee   : > { %v646_v53 = vpop.permute.xlu0 %645 }
 0x2ef   : > { %v651_v57 = vsel %vm266_vm3, %v644_v50, %v646_v53  ;;  %v652_v58 = vsel %vm266_vm3, %v646_v53, %v648_v52 }
 0x2f0   : > { %v659_v63 = vsel %vm347_vm7, %v651_v57, 0 }
 0x2f1   : > { %v642_v54 = vpop.permute.xlu1 %641 }
 0x2f2   : > { %v650_v55 = vsel %vm266_vm3, %v640_v49, %v642_v54  ;;  %v733_v59 = vpop.permute.xlu0 %732 }
 0x2f3   : > { %664 = vmatprep.subr.bf16.mxu1 %v650_v55  ;;  %v742_v3 = vsel %vm432_vm6, %v731_v51, %v733_v59 }
 0x2f4   : > { %665 = vmatpush1.bf16.msra.mxu1 %v649_v56 }
 0x2f5   : > { %v735_v60 = vpop.permute.xlu1 %734  ;;  %939 = vmatprep.subr.msk.bf16.mxu1 %vm347_vm7, %v652_v58 }
 0x2f6   : > { %v743_v61 = vsel %vm432_vm6, %v733_v59, %v735_v60  ;;  %v739_v6 = vpop.permute.xlu0 %738 }
 0x2f7   : > { %757 = vmatprep.subr.bf16.mxu0 %v743_v61 }
 0x2f8   : > { %667 = vmatpush1.bf16.msra.mxu1 %v659_v63  ;;  %758 = vmatpush1.bf16.msra.mxu0 %v742_v3 }
 0x2f9   : > { %v737_v5 = vpop.permute.xlu1 %736  ;;  %809 = vmatprep.subr.bf16.mxu1 %v627_v41 }
 0x2fa   : > { %v744_v7 = vsel %vm432_vm6, %v737_v5, %v739_v6 }
 0x2fb   : > { %940 = vmatmul.mubr.msk.bf16.vlgmr.msra.gmra.mrb[4].mxu1 %vm343_vm8, %v615_v4  ;;  %v752_v10 = vsel %vm347_vm7, %v744_v7, 0 }
 0x2fc   : > { %810 = vmatpush1.bf16.msra.mxu1 %v626_v37  ;;  %841 = vmatprep.mubr.bf16.mxu1 %v978_v18  ;;  %v941_v18 = vld [vmem:[%s1190_s4 + $0x4] sm:$0xf] }
 0x2fd   : > { %v741_v8 = vpop.permute.xlu1 %740  ;;  %945 = vmatprep.subr.msk.bf16.mxu1 %vm347_vm7, %v630_v39 }
 0x2fe   : > { %v745_v9 = vsel %vm432_vm6, %v739_v6, %v741_v8 }
 0x2ff   : > { %943 = vmatprep.subr.msk.bf16.mxu0 %vm347_vm7, %v745_v9 }
 0x300   : > { %760 = vmatpush1.bf16.msra.mxu0 %v752_v10  ;;  %812 = vmatpush1.bf16.msra.mxu1 %v804_v11 }
 0x303   : > { %944 = vmatmul.mubr.msk.bf16.vlgmr.msra.gmra.mrb[8].mxu0 %vm343_vm8, %v942_v12  ;;  %946 = vmatmul.mubr.msk.bf16.vlgmr.msra.gmra.mrb[8].mxu1 %vm343_vm8, %v941_v18 }
 0x307   : > { %v858_v33 = vpop.permute.xlu0 %857 }
 0x3ce   : > { %v698_v13 = vpop.f32.mrb[4].mxu1 }
 0x3cf   : > { %v700_v14 = vpop.f32.mrb[5].mxu1  ;;  %v798_v17 = vmul.f32 %v698_v13, %v1110_v62 }
 0x3d0   : > { %v702_v15 = vpop.f32.mrb[6].mxu1  ;;  %v799_v19 = vmul.f32 %v700_v14, %v1112_v0 }
 0x3d1   : > { %v703_v16 = vpop.f32.mrb[7].mxu1 }
 0x3d6   : > { %v791_v20 = vpop.f32.mrb[8].mxu0  ;;  %v843_v21 = vpop.f32.mrb[8].mxu1 }
 0x3d7   : > { %v850_v22 = vmul.f32 %v791_v20, %v1114_v1  ;;  %v844_v23 = vadd.f32 %v843_v21, %v798_v17  ;;  %v793_v24 = vpop.f32.mrb[9].mxu0  ;;  %v845_v25 = vpop.f32.mrb[9].mxu1 }
 0x3d8   : > { %v851_v26 = vmul.f32 %v793_v24, %v1116_v2  ;;  %v846_v27 = vadd.f32 %v845_v25, %v799_v19  ;;  %v795_v28 = vpop.f32.mrb[10].mxu0  ;;  %v847_v29 = vpop.f32.mrb[10].mxu1 }
 0x3d9   : > { %v852_v30 = vadd.f32 %v850_v22, %v844_v23  ;;  %v796_v31 = vpop.f32.mrb[11].mxu0  ;;  %v848_v32 = vpop.f32.mrb[11].mxu1 }
 0x3da   : > { %v853_v62 = vadd.f32 %v851_v26, %v846_v27 }
 0x3db   : > { %v860_v34 = vadd.f32 %v858_v33, %v852_v30 }
 0x3dc   : > { %v861_v0 = vadd.f32 %v858_v33, %v853_v62 }
 0x3dd   : > { %v862_v1 = vmax.f32 %v860_v34, 0.0 }
 0x3de   : > { %v863_v35 = vmax.f32 %v861_v0, 0.0 }
 0x3df   : > { %864 = vst [vmem:[%s251_s9] sm:$0xff] %v862_v1 }
 0x3e0   : > { %865 = vst [vmem:[%s251_s9 + $0x8] sm:$0xff] %v863_v35 }
 0x3e1 PF: > { %s16_s21 = sadd.s32 1, %s972_s21  }
 0x3e2   : > { %p13_p4 = scmp.ge.s32.totalorder %s16_s21, 4  }
 0x3e4   :  { %15 = sbr.rel (!%p13_p4) target bundleno = 1 (0x1), region = 79 }

</bundles_post_ra>
